<compile_context>
chip_gen: v7x
topology: tpu7x:2x2x1
jax: 0.10.0
libtpu: 0.0.40
codegen_flags: <defaults>
</compile_context>

<pallas_src>
import jax
import jax.numpy as jnp
from jax.experimental import pallas as pl
from jax.experimental.pallas import tpu as pltpu

NEG_SLOPE = 0.2


def _leaky_relu(v):
    return jnp.where(v > 0, v, NEG_SLOPE * v)


def _banded_weights(w, W):
    """Turn a (kh, kw, Cin, Cout) conv weight into kh banded matmul RHS's.

    Returns (kh, W*Cin, W*Cout) float32 such that, with a[y, x*Cin + ci] being
    the row-flattened activation slab and a_clampH the H-replication-clamped
    rows:

        out[y, x*Cout + co] = sum_dy (a_clampH[y + dy - 1] @ B[dy])[x*Cout + co]

    equals the replication-padded 'same' 3x3 cross-correlation (torch Conv2d
    after ReplicationPad2d(1)).  The dx taps AND the W-edge clamp are folded
    into B, so no W padding is ever materialized.
    """
    kh, kw, Cin, Cout = w.shape
    x_idx = jnp.arange(W)
    # source column feeding output column x through tap dx (replication clamp)
    src = jnp.clip(x_idx[None, :] + jnp.arange(kw)[:, None] - (kw // 2), 0, W - 1)
    # S[dx, jx, x] = 1 iff input column jx feeds output column x via tap dx
    S = (jnp.arange(W)[None, :, None] == src[:, None, :]).astype(jnp.float32)
    # T[dy, jx, ci, x, co] = sum_dx S[dx, jx, x] * w[dy, dx, ci, co]
    T = jnp.einsum("djx,kdio->kjixo", S, w.astype(jnp.float32))
    return T.reshape(kh, W * Cin, W * Cout)


def _pad_rows(a):
    """Replication-pad by 1 along the leading (H) axis of a 2-D slab."""
    return jnp.concatenate([a[:1], a, a[-1:]], axis=0)


def resblock_kernel(x_ref, b1_ref, b2_ref, o_ref):
    # x_ref : (1, H, W*Cin)          lane-dense unpadded input block
    # b1_ref: (3, W*Cin, W*(C1+C2))  fused conv1 + down banded weights
    # b2_ref: (3, W*C1, W*C2)        conv2 banded weights
    x = x_ref[0].astype(jnp.float32)             # (H, W*Cin)
    H = x.shape[0]
    wc1 = b2_ref.shape[1]                        # W*C1 (= 128 here)

    # --- fused conv1 + down conv: 3 accumulated MXU matmuls -----------------
    xp = _pad_rows(x)                            # (H+2, W*Cin), tiny in-kernel pad
    acc1 = jnp.dot(xp[0:H, :], b1_ref[0], preferred_element_type=jnp.float32)
    for dy in range(1, 3):                       # static unroll
        acc1 = acc1 + jnp.dot(xp[dy:dy + H, :], b1_ref[dy],
                              preferred_element_type=jnp.float32)
    h1 = _leaky_relu(acc1[:, :wc1])              # conv path after layer 1
    dn = _leaky_relu(acc1[:, wc1:])              # down path (keeps its relu)

    # --- conv2 (final relu of the conv path is skipped) ---------------------
    h1p = _pad_rows(h1)                          # (H+2, W*C1)
    acc2 = jnp.dot(h1p[0:H, :], b2_ref[0], preferred_element_type=jnp.float32)
    for dy in range(1, 3):
        acc2 = acc2 + jnp.dot(h1p[dy:dy + H, :], b2_ref[dy],
                              preferred_element_type=jnp.float32)

    # --- residual add + output LeakyReLU, unmasked 128-lane store -----------
    o_ref[0] = _leaky_relu(acc2 + dn).astype(o_ref.dtype)


@jax.jit
def resblock_forward(x_nchw, w1, w2, wd):
    """ResBlock forward. x_nchw: (N, Cin, H, W); weights (kh, kw, Cin, Cout)."""
    N, Cin, H, W = x_nchw.shape
    C1, C2 = w1.shape[-1], w2.shape[-1]

    # Layout plumbing only: NCHW -> lane-dense (N, H, W*Cin), channels fastest.
    x_flat = jnp.transpose(x_nchw, (0, 2, 3, 1)).reshape(N, H, W * Cin)

    # One-time weight preprocessing: banded RHS matrices (dx taps + W-edge
    # clamp folded in).  conv1 and down share the input -> fuse their RHS's.
    B1 = jnp.concatenate([_banded_weights(w1, W), _banded_weights(wd, W)],
                         axis=-1)                        # (3, W*Cin, W*(C1+C2))
    B2 = _banded_weights(w2, W)                          # (3, W*C1, W*C2)

    out_flat = pl.pallas_call(
        resblock_kernel,
        out_shape=jax.ShapeDtypeStruct((N, H, W * C2), x_nchw.dtype),
        grid_spec=pltpu.PrefetchScalarGridSpec(
            num_scalar_prefetch=0,
            grid=(N,),                      # one batch element per grid step
            in_specs=[
                pl.BlockSpec((1, H, W * Cin), lambda n: (n, 0, 0)),
                pl.BlockSpec((3, W * Cin, W * (C1 + C2)), lambda n: (0, 0, 0)),
                pl.BlockSpec((3, W * C1, W * C2), lambda n: (0, 0, 0)),
            ],
            out_specs=pl.BlockSpec((1, H, W * C2), lambda n: (n, 0, 0)),
        ),
        compiler_params=pltpu.CompilerParams(
            dimension_semantics=("parallel",)),
    )(x_flat, B1, B2)

    # Back to NCHW to match the PyTorch module.
    return jnp.transpose(out_flat.reshape(N, H, W, C2), (0, 3, 1, 2))


def ref_resblock(x_nchw, w1, w2, wd):
    """Pure-JAX reference matching the PyTorch module exactly."""
    def conv(x, w):
        xpad = jnp.pad(x, ((0, 0), (0, 0), (1, 1), (1, 1)), mode="edge")
        w_oihw = jnp.transpose(w, (3, 2, 0, 1))
        return jax.lax.conv_general_dilated(
            xpad, w_oihw, window_strides=(1, 1), padding="VALID",
            dimension_numbers=("NCHW", "OIHW", "NCHW"))

    h = _leaky_relu(conv(x_nchw, w1))
    h = conv(h, w2)                      # skip_final_relu=True
    d = _leaky_relu(conv(x_nchw, wd))    # down path keeps its LeakyReLU
    return _leaky_relu(h + d)


if __name__ == "__main__":
    # ResBlock(dims=[4, 8, 8]) on a small NCHW input.
    N, Cin, H, W = 2, 4, 16, 16
    dims = [4, 8, 8]
    C1, C2 = dims[1], dims[2]

    key = jax.random.PRNGKey(0)
    k1, k2, k3, kx = jax.random.split(key, 4)

    # Deterministic synthetic weights (Kaiming-like scale); bias=False since
    # spectral=False, so no bias terms exist in the module.
    w1 = jax.random.normal(k1, (3, 3, Cin, C1), jnp.float32) * (2.0 / (9 * Cin)) ** 0.5
    w2 = jax.random.normal(k2, (3, 3, C1, C2), jnp.float32) * (2.0 / (9 * C1)) ** 0.5
    wd = jax.random.normal(k3, (3, 3, Cin, C2), jnp.float32) * (2.0 / (9 * Cin)) ** 0.5
    x = jax.random.normal(kx, (N, Cin, H, W), jnp.float32)

    y = jax.block_until_ready(resblock_forward(x, w1, w2, wd))
    y_ref = ref_resblock(x, w1, w2, wd)

    assert y.shape == (N, C2, H, W), y.shape
    assert jnp.allclose(y, y_ref, atol=1e-3, rtol=1e-3), \
        float(jnp.max(jnp.abs(y - y_ref)))
    print("KERNEL_OK")
</pallas_src>

<mosaic_0001>
module attributes {stable_mosaic.version = 11 : i64} {
  func.func @resblock_kernel(%arg0: i32, %arg1: memref<1x16x64xf32, #tpu.memory_space<vmem>>, %arg2: memref<3x64x256xf32, #tpu.memory_space<vmem>>, %arg3: memref<3x128x128xf32, #tpu.memory_space<vmem>>, %arg4: memref<1x16x128xf32, #tpu.memory_space<vmem>>) attributes {dimension_semantics = [#tpu.dimension_semantics<parallel>], iteration_bounds = array<i64: 2>, scalar_prefetch = 0 : i64, scratch_operands = 0 : i64, tpu.core_type = #tpu.core_type<tc>, window_params = [{transform_indices = @transform_0, window_bounds = array<i64: 1, 16, 64>}, {pipeline_mode = #tpu.pipeline_mode<synchronous>, transform_indices = @transform_1, window_bounds = array<i64: 3, 64, 256>}, {pipeline_mode = #tpu.pipeline_mode<synchronous>, transform_indices = @transform_2, window_bounds = array<i64: 3, 128, 128>}, {transform_indices = @transform_3, window_bounds = array<i64: 1, 16, 128>}]} {
    %c0 = arith.constant 0 : index
    %c0_0 = arith.constant 0 : index
    %c0_1 = arith.constant 0 : index
    %0 = vector.load %arg1[%c0, %c0_0, %c0_1] : memref<1x16x64xf32, #tpu.memory_space<vmem>>, vector<1x16x64xf32>
    %1 = vector.shape_cast %0 : vector<1x16x64xf32> to vector<16x64xf32>
    %2 = vector.extract_strided_slice %1 {offsets = [0, 0], sizes = [1, 64], strides = [1, 1]} : vector<16x64xf32> to vector<1x64xf32>
    %3 = vector.extract_strided_slice %1 {offsets = [15, 0], sizes = [1, 64], strides = [1, 1]} : vector<16x64xf32> to vector<1x64xf32>
    %4 = tpu.concatenate %2, %1, %3 in 0 : vector<1x64xf32>, vector<16x64xf32>, vector<1x64xf32> -> vector<18x64xf32>
    %5 = vector.extract_strided_slice %4 {offsets = [0, 0], sizes = [16, 64], strides = [1, 1]} : vector<18x64xf32> to vector<16x64xf32>
    %c0_2 = arith.constant 0 : index
    %c0_3 = arith.constant 0 : index
    %c0_4 = arith.constant 0 : index
    %6 = vector.load %arg2[%c0_2, %c0_3, %c0_4] : memref<3x64x256xf32, #tpu.memory_space<vmem>>, vector<1x64x256xf32>
    %7 = vector.shape_cast %6 : vector<1x64x256xf32> to vector<64x256xf32>
    %cst = arith.constant dense<0.000000e+00> : vector<16x256xf32>
    %8 = tpu.matmul %5, %7, %cst {dimension_numbers = #tpu.dot_dimension_numbers<[1], [0], [0], [1], [0, 0, 1, 1], [], []>} : vector<16x64xf32>, vector<64x256xf32>, vector<16x256xf32> -> vector<16x256xf32>
    %9 = vector.extract_strided_slice %4 {offsets = [1, 0], sizes = [16, 64], strides = [1, 1]} : vector<18x64xf32> to vector<16x64xf32>
    %c1 = arith.constant 1 : index
    %c0_5 = arith.constant 0 : index
    %c0_6 = arith.constant 0 : index
    %10 = vector.load %arg2[%c1, %c0_5, %c0_6] : memref<3x64x256xf32, #tpu.memory_space<vmem>>, vector<1x64x256xf32>
    %11 = vector.shape_cast %10 : vector<1x64x256xf32> to vector<64x256xf32>
    %cst_7 = arith.constant dense<0.000000e+00> : vector<16x256xf32>
    %12 = tpu.matmul %9, %11, %cst_7 {dimension_numbers = #tpu.dot_dimension_numbers<[1], [0], [0], [1], [0, 0, 1, 1], [], []>} : vector<16x64xf32>, vector<64x256xf32>, vector<16x256xf32> -> vector<16x256xf32>
    %13 = arith.addf %8, %12 : vector<16x256xf32>
    %14 = vector.extract_strided_slice %4 {offsets = [2, 0], sizes = [16, 64], strides = [1, 1]} : vector<18x64xf32> to vector<16x64xf32>
    %c2 = arith.constant 2 : index
    %c0_8 = arith.constant 0 : index
    %c0_9 = arith.constant 0 : index
    %15 = vector.load %arg2[%c2, %c0_8, %c0_9] : memref<3x64x256xf32, #tpu.memory_space<vmem>>, vector<1x64x256xf32>
    %16 = vector.shape_cast %15 : vector<1x64x256xf32> to vector<64x256xf32>
    %cst_10 = arith.constant dense<0.000000e+00> : vector<16x256xf32>
    %17 = tpu.matmul %14, %16, %cst_10 {dimension_numbers = #tpu.dot_dimension_numbers<[1], [0], [0], [1], [0, 0, 1, 1], [], []>} : vector<16x64xf32>, vector<64x256xf32>, vector<16x256xf32> -> vector<16x256xf32>
    %18 = arith.addf %13, %17 : vector<16x256xf32>
    %19 = vector.extract_strided_slice %18 {offsets = [0, 0], sizes = [16, 128], strides = [1, 1]} : vector<16x256xf32> to vector<16x128xf32>
    %cst_11 = arith.constant 0.000000e+00 : f32
    %20 = vector.broadcast %cst_11 : f32 to vector<16x128xf32>
    %21 = arith.cmpf ogt, %19, %20 : vector<16x128xf32>
    %cst_12 = arith.constant 2.000000e-01 : f32
    %22 = vector.broadcast %cst_12 : f32 to vector<16x128xf32>
    %23 = arith.mulf %22, %19 : vector<16x128xf32>
    %24 = arith.select %21, %19, %23 : vector<16x128xi1>, vector<16x128xf32>
    %25 = vector.extract_strided_slice %18 {offsets = [0, 128], sizes = [16, 128], strides = [1, 1]} : vector<16x256xf32> to vector<16x128xf32>
    %cst_13 = arith.constant 0.000000e+00 : f32
    %26 = vector.broadcast %cst_13 : f32 to vector<16x128xf32>
    %27 = arith.cmpf ogt, %25, %26 : vector<16x128xf32>
    %cst_14 = arith.constant 2.000000e-01 : f32
    %28 = vector.broadcast %cst_14 : f32 to vector<16x128xf32>
    %29 = arith.mulf %28, %25 : vector<16x128xf32>
    %30 = arith.select %27, %25, %29 : vector<16x128xi1>, vector<16x128xf32>
    %31 = vector.extract_strided_slice %24 {offsets = [0, 0], sizes = [1, 128], strides = [1, 1]} : vector<16x128xf32> to vector<1x128xf32>
    %32 = vector.extract_strided_slice %24 {offsets = [15, 0], sizes = [1, 128], strides = [1, 1]} : vector<16x128xf32> to vector<1x128xf32>
    %33 = tpu.concatenate %31, %24, %32 in 0 : vector<1x128xf32>, vector<16x128xf32>, vector<1x128xf32> -> vector<18x128xf32>
    %34 = vector.extract_strided_slice %33 {offsets = [0, 0], sizes = [16, 128], strides = [1, 1]} : vector<18x128xf32> to vector<16x128xf32>
    %c0_15 = arith.constant 0 : index
    %c0_16 = arith.constant 0 : index
    %c0_17 = arith.constant 0 : index
    %35 = vector.load %arg3[%c0_15, %c0_16, %c0_17] : memref<3x128x128xf32, #tpu.memory_space<vmem>>, vector<1x128x128xf32>
    %36 = vector.shape_cast %35 : vector<1x128x128xf32> to vector<128x128xf32>
    %cst_18 = arith.constant dense<0.000000e+00> : vector<16x128xf32>
    %37 = tpu.matmul %34, %36, %cst_18 {dimension_numbers = #tpu.dot_dimension_numbers<[1], [0], [0], [1], [0, 0, 1, 1], [], []>} : vector<16x128xf32>, vector<128x128xf32>, vector<16x128xf32> -> vector<16x128xf32>
    %38 = vector.extract_strided_slice %33 {offsets = [1, 0], sizes = [16, 128], strides = [1, 1]} : vector<18x128xf32> to vector<16x128xf32>
    %c1_19 = arith.constant 1 : index
    %c0_20 = arith.constant 0 : index
    %c0_21 = arith.constant 0 : index
    %39 = vector.load %arg3[%c1_19, %c0_20, %c0_21] : memref<3x128x128xf32, #tpu.memory_space<vmem>>, vector<1x128x128xf32>
    %40 = vector.shape_cast %39 : vector<1x128x128xf32> to vector<128x128xf32>
    %cst_22 = arith.constant dense<0.000000e+00> : vector<16x128xf32>
    %41 = tpu.matmul %38, %40, %cst_22 {dimension_numbers = #tpu.dot_dimension_numbers<[1], [0], [0], [1], [0, 0, 1, 1], [], []>} : vector<16x128xf32>, vector<128x128xf32>, vector<16x128xf32> -> vector<16x128xf32>
    %42 = arith.addf %37, %41 : vector<16x128xf32>
    %43 = vector.extract_strided_slice %33 {offsets = [2, 0], sizes = [16, 128], strides = [1, 1]} : vector<18x128xf32> to vector<16x128xf32>
    %c2_23 = arith.constant 2 : index
    %c0_24 = arith.constant 0 : index
    %c0_25 = arith.constant 0 : index
    %44 = vector.load %arg3[%c2_23, %c0_24, %c0_25] : memref<3x128x128xf32, #tpu.memory_space<vmem>>, vector<1x128x128xf32>
    %45 = vector.shape_cast %44 : vector<1x128x128xf32> to vector<128x128xf32>
    %cst_26 = arith.constant dense<0.000000e+00> : vector<16x128xf32>
    %46 = tpu.matmul %43, %45, %cst_26 {dimension_numbers = #tpu.dot_dimension_numbers<[1], [0], [0], [1], [0, 0, 1, 1], [], []>} : vector<16x128xf32>, vector<128x128xf32>, vector<16x128xf32> -> vector<16x128xf32>
    %47 = arith.addf %42, %46 : vector<16x128xf32>
    %48 = arith.addf %47, %30 : vector<16x128xf32>
    %cst_27 = arith.constant 0.000000e+00 : f32
    %49 = vector.broadcast %cst_27 : f32 to vector<16x128xf32>
    %50 = arith.cmpf ogt, %48, %49 : vector<16x128xf32>
    %cst_28 = arith.constant 2.000000e-01 : f32
    %51 = vector.broadcast %cst_28 : f32 to vector<16x128xf32>
    %52 = arith.mulf %51, %48 : vector<16x128xf32>
    %53 = arith.select %50, %48, %52 : vector<16x128xi1>, vector<16x128xf32>
    %c0_29 = arith.constant 0 : index
    %c0_30 = arith.constant 0 : index
    %c0_31 = arith.constant 0 : index
    %54 = vector.load %arg4[%c0_29, %c0_30, %c0_31] : memref<1x16x128xf32, #tpu.memory_space<vmem>>, vector<1x16x128xf32>
    %55 = vector.shape_cast %54 : vector<1x16x128xf32> to vector<16x128xf32>
    %56 = vector.shape_cast %53 : vector<16x128xf32> to vector<1x16x128xf32>
    tpu.vector_store %arg4[%c0_29, %c0_30, %c0_31], %56 {strides = array<i32>} : memref<1x16x128xf32, #tpu.memory_space<vmem>>, vector<1x16x128xf32>,
    return
  }
  func.func @transform_0(%arg0: i32) -> (i32, i32, i32) {
    %c0_i32 = arith.constant 0 : i32
    %c0_i32_0 = arith.constant 0 : i32
    %c0_i32_1 = arith.constant 0 : i32
    return %arg0, %c0_i32, %c0_i32_0 : i32, i32, i32
  }
  func.func @transform_1(%arg0: i32) -> (i32, i32, i32) {
    %c0_i32 = arith.constant 0 : i32
    %c0_i32_0 = arith.constant 0 : i32
    %c0_i32_1 = arith.constant 0 : i32
    %c0_i32_2 = arith.constant 0 : i32
    return %c0_i32, %c0_i32_0, %c0_i32_1 : i32, i32, i32
  }
  func.func @transform_2(%arg0: i32) -> (i32, i32, i32) {
    %c0_i32 = arith.constant 0 : i32
    %c0_i32_0 = arith.constant 0 : i32
    %c0_i32_1 = arith.constant 0 : i32
    %c0_i32_2 = arith.constant 0 : i32
    return %c0_i32, %c0_i32_0, %c0_i32_1 : i32, i32, i32
  }
  func.func @transform_3(%arg0: i32) -> (i32, i32, i32) {
    %c0_i32 = arith.constant 0 : i32
    %c0_i32_0 = arith.constant 0 : i32
    %c0_i32_1 = arith.constant 0 : i32
    return %arg0, %c0_i32, %c0_i32_0 : i32, i32, i32
  }
}

</mosaic_0001>

<bundles_post_ra>
// kernel: resblock_forward.1
= control target key start
LH: loop header
LB: loop body
LE: loop exit
PB: predicated region body
PF: predicated region fallthrough
CT: control target
= control target key end

     0   :  { %s1315_s12 = smov 0   ;;  %s1677_s0 = inlined_call_operand.vmem [shape: f32[2,16,64], index: 0, kind: input, shape index: {}]   ;;  %s1678_s1 = inlined_call_operand.vmem [shape: f32[3,64,256], index: 1, kind: input, shape index: {}]   ;;  %s1679_s2 = inlined_call_operand.vmem [shape: f32[3,128,128], index: 2, kind: input, shape index: {}]   ;;  %s1680_s3 = inlined_call_operand.vmem [shape: f32[2,16,128], index: 3, kind: output, shape index: {}]  }
   0x1 LB: > { %s879_s13 = sadd.s32 4294967295, %s1292_s12   ;;  %p883_p0 = scmp.ge.s32.totalorder %s1292_s12, 1  ;;  %s1292_s12 = sphi %s1315_s12, %s13_s12  }
   0x2   : > { %p137_p1 = scmp.lt.s32.totalorder %s1292_s12, 3 }
   0x4   : > { %p138_p2 = pnand %p883_p0, %p137_p1 }
   0x5   : > { %v889_v0 = vld [vmem:[%s1678_s1 + $0x88] sm:$0xff] (!%p138_p2)  ;;  %v891_v1 = vld [vmem:[%s1678_s1 + $0x98] sm:$0xff] (!%p138_p2)  ;;  %v888_v2 = vld [vmem:[%s1678_s1 + $0x80] sm:$0xff] (!%p138_p2)  ;;  %p161_p3 = scmp.lt.s32.totalorder (!%p138_p2), %s879_s13, 1  ;;  %v1294_v7 = vmov (!%p138_p2), 0.0   ;;  %vm175_vm0 = vcmask (!%p138_p2), 1040384  }
   0x6   : > { %141 = sbr.rel (%p138_p2) target bundleno = 531 (0x213), region = 32  ;;  %v1121_v3 = vpack.c.bf16 (!%p138_p2), %v891_v1, %v889_v0  ;;  %v890_v4 = vld [vmem:[%s1678_s1 + $0x90] sm:$0xff] (!%p138_p2)  ;;  %v893_v5 = vld [vmem:[%s1678_s1 + $0xa8] sm:$0xff] (!%p138_p2)  ;;  %v895_v6 = vld [vmem:[%s1678_s1 + $0xb8] sm:$0xff] (!%p138_p2)  ;;  %295 = vmatprep.mubr.f32.mxu0 (!%p138_p2), %v1294_v7  ;;  %vm220_vm1 = vcmask (!%p138_p2), 1046528   ;;  %vm226_vm2 = vcmask (!%p138_p2), 523264  }
   0x7   : > { %v1123_v8 = vpack.c.bf16 (!%p138_p2), %v890_v4, %v888_v2  ;;  %v1125_v9 = vpack.c.bf16 (!%p138_p2), %v895_v6, %v893_v5  ;;  %v892_v10 = vld [vmem:[%s1678_s1 + $0xa0] sm:$0xff] (!%p138_p2)  ;;  %v894_v11 = vld [vmem:[%s1678_s1 + $0xb0] sm:$0xff] (!%p138_p2)  ;;  %v897_v12 = vld [vmem:[%s1678_s1 + $0xc8] sm:$0xff] (!%p138_p2)  ;;  %vm406_vm3 = vcmask (!%p138_p2), 1045504  }
   0x8   : > { %1122 = vmatprep.subr.bf16.mxu0 (!%p138_p2), %v1121_v3  ;;  %v899_v13 = vld [vmem:[%s1678_s1 + $0xd8] sm:$0xff] (!%p138_p2)  ;;  %v1127_v14 = vpack.c.bf16 (!%p138_p2), %v894_v11, %v892_v10  ;;  %v896_v16 = vld [vmem:[%s1678_s1 + $0xc0] sm:$0xff] (!%p138_p2)  ;;  %v898_v17 = vld [vmem:[%s1678_s1 + $0xd0] sm:$0xff] (!%p138_p2) }
   0x9   : > { %1124 = vmatpush1.bf16.msra.mxu0 (!%p138_p2), %v1123_v8  ;;  %v1129_v15 = vpack.c.bf16 (!%p138_p2), %v899_v13, %v897_v12  ;;  %v901_v18 = vld [vmem:[%s1678_s1 + $0xe8] sm:$0xff] (!%p138_p2)  ;;  %v903_v19 = vld [vmem:[%s1678_s1 + $0xf8] sm:$0xff] (!%p138_p2)  ;;  %v1131_v24 = vpack.c.bf16 (!%p138_p2), %v898_v17, %v896_v16  ;;  %v900_v26 = vld [vmem:[%s1678_s1 + $0xe0] sm:$0xff] (!%p138_p2) }
   0xa   : > { %1126 = vmatprep.subr.bf16.mxu0 (!%p138_p2), %v1125_v9  ;;  %v1133_v25 = vpack.c.bf16 (!%p138_p2), %v903_v19, %v901_v18  ;;  %v902_v27 = vld [vmem:[%s1678_s1 + $0xf0] sm:$0xff] (!%p138_p2)  ;;  %v186_v31 = vld [vmem:[%s1678_s1 + $0x8] sm:$0xff] (!%p138_p2)  ;;  %v188_v32 = vld [vmem:[%s1678_s1 + $0x18] sm:$0xff] (!%p138_p2) }
   0xb   : > { %v1135_v33 = vpack.c.bf16 (!%p138_p2), %v902_v27, %v900_v26  ;;  %v1137_v36 = vpack.c.bf16 (!%p138_p2), %v188_v32, %v186_v31  ;;  %v185_v37 = vld [vmem:[%s1678_s1] sm:$0xff] (!%p138_p2)  ;;  %v187_v38 = vld [vmem:[%s1678_s1 + $0x10] sm:$0xff] (!%p138_p2)  ;;  %v190_v40 = vld [vmem:[%s1678_s1 + $0x28] sm:$0xff] (!%p138_p2) }
   0xc   : > { %v192_v41 = vld [vmem:[%s1678_s1 + $0x38] sm:$0xff] (!%p138_p2)  ;;  %v1139_v43 = vpack.c.bf16 (!%p138_p2), %v187_v38, %v185_v37  ;;  %v189_v44 = vld [vmem:[%s1678_s1 + $0x20] sm:$0xff] (!%p138_p2)  ;;  %v191_v45 = vld [vmem:[%s1678_s1 + $0x30] sm:$0xff] (!%p138_p2) }
   0xd   : > { %s1682_s13 = smov (!%p161_p3, %s879_s13), 1  ;;  %1128 = vmatpush1.bf16.msra.mxu0 %v1127_v14  ;;  %v1141_v47 = vpack.c.bf16 %v192_v41, %v190_v40  ;;  %v521_v48 = vld [vmem:[%s1679_s2] sm:$0xff]  ;;  %v522_v49 = vld [vmem:[%s1679_s2 + $0x8] sm:$0xff]  ;;  %v523_v50 = vld [vmem:[%s1679_s2 + $0x10] sm:$0xff]  ;;  %v1143_v56 = vpack.c.bf16 %v191_v45, %v189_v44 }
   0xe   : > { %s960_s7 = sshll.u32 %s1682_s13, 4  ;;  %1130 = vmatprep.subr.bf16.mxu0 %v1129_v15  ;;  %v194_v51 = vld [vmem:[%s1678_s1 + $0x48] sm:$0xff]  ;;  %v196_v52 = vld [vmem:[%s1678_s1 + $0x58] sm:$0xff]  ;;  %v1201_v53 = vpack.c.bf16 %v522_v49, %v521_v48  ;;  %v525_v58 = vld [vmem:[%s1679_s2 + $0x20] sm:$0xff] }
   0xf   : > { %s165_s18 = scalar_lea.vmem %s1677_s0, %s960_s7  ;;  %v524_v54 = vld [vmem:[%s1679_s2 + $0x18] sm:$0xff]  ;;  %v526_v59 = vld [vmem:[%s1679_s2 + $0x28] sm:$0xff]  ;;  %v1145_v60 = vpack.c.bf16 %v196_v52, %v194_v51  ;;  %v193_v61 = vld [vmem:[%s1678_s1 + $0x40] sm:$0xff]  ;;  %s170_s19 = scalar_lea.vmem %s1680_s3, %s960_s7 }
  0x10   : > { %v171_v20 = vld [vmem:[%s165_s18] sm:$0xff]  ;;  %v172_v21 = vld [vmem:[%s165_s18 + $0x8] sm:$0xff]  ;;  %v1205_v55 = vpack.c.bf16 %v524_v54, %v523_v50  ;;  %v195_v62 = vld [vmem:[%s1678_s1 + $0x50] sm:$0xff]  ;;  %1202 = vmatprep.subr.bf16.mxu1 %v1201_v53  ;;  %v1209_v1 = vpack.c.bf16 %v526_v59, %v525_v58 }
  0x11   : > { %v176_v22 = vrot.slane %v171_v20, 7  ;;  %v177_v23 = vrot.slane %v172_v21, 7  ;;  %v181_v30 = vrot.slane %v172_v21, 6  ;;  %1132 = vmatpush1.bf16.msra.mxu0 %v1131_v24  ;;  %v198_v63 = vld [vmem:[%s1678_s1 + $0x68] sm:$0xff]  ;;  %v200_v0 = vld [vmem:[%s1678_s1 + $0x78] sm:$0xff]  ;;  %1204 = vmatpush3.bf16.msra.mxu1 %v1201_v53  ;;  %v1147_v2 = vpack.c.bf16 %v195_v62, %v193_v61  ;;  %v527_v3 = vld [vmem:[%s1679_s2 + $0x30] sm:$0xff] }
  0x12   : > { %1134 = vmatprep.subr.bf16.mxu0 %v1133_v25  ;;  %1206 = vmatprep.subr.bf16.mxu1 %v1205_v55  ;;  %v528_v4 = vld [vmem:[%s1679_s2 + $0x38] sm:$0xff]  ;;  %v1149_v5 = vpack.c.bf16 %v200_v0, %v198_v63  ;;  %v197_v6 = vld [vmem:[%s1678_s1 + $0x60] sm:$0xff]  ;;  %v199_v8 = vld [vmem:[%s1678_s1 + $0x70] sm:$0xff] }
  0x13   : > { %v1381_v28 = vsel %vm175_vm0, %v176_v22, %v177_v23  ;;  %v1384_v29 = vsel %vm175_vm0, %v171_v20, %v176_v22  ;;  %v1401_v39 = vsel %vm175_vm0, %v177_v23, %v181_v30  ;;  %v909_v9 = vld [vmem:[%s1678_s1 + $0x108] sm:$0xff]  ;;  %v911_v10 = vld [vmem:[%s1678_s1 + $0x118] sm:$0xff]  ;;  %v1213_v11 = vpack.c.bf16 %v528_v4, %v527_v3  ;;  %v529_v13 = vld [vmem:[%s1679_s2 + $0x40] sm:$0xff] }
  0x14   : > { %v221_v34 = vrot.slane %v1384_v29, 1  ;;  %v222_v35 = vrot.slane %v1381_v28, 1  ;;  %v224_v46 = vrot.slane %v1401_v39, 1  ;;  %v1151_v12 = vpack.c.bf16 %v199_v8, %v197_v6  ;;  %v530_v14 = vld [vmem:[%s1679_s2 + $0x48] sm:$0xff]  ;;  %v908_v16 = vld [vmem:[%s1678_s1 + $0x100] sm:$0xff]  ;;  %v910_v17 = vld [vmem:[%s1678_s1 + $0x110] sm:$0xff] }
  0x15   : > { %1136 = vmatpush1.bf16.msra.mxu0 %v1135_v33  ;;  %1208 = vmatpush3.bf16.msra.mxu1 %v1205_v55  ;;  %v1153_v15 = vpack.c.bf16 %v911_v10, %v909_v9  ;;  %v913_v18 = vld [vmem:[%s1678_s1 + $0x128] sm:$0xff]  ;;  %v915_v19 = vld [vmem:[%s1678_s1 + $0x138] sm:$0xff]  ;;  %v1217_v20 = vpack.c.bf16 %v530_v14, %v529_v13  ;;  %v1155_v21 = vpack.c.bf16 %v910_v17, %v908_v16  ;;  %v531_v22 = vld [vmem:[%s1679_s2 + $0x50] sm:$0xff]  ;;  %v407_v45 = vrot.slane %v1384_v29, 2 }
  0x16   : > { %v223_v42 = vsel %vm220_vm1, %v221_v34, %v222_v35  ;;  %1138 = vmatprep.subr.bf16.mxu0 %v1137_v36  ;;  %v225_v57 = vsel %vm220_vm1, %v222_v35, %v224_v46  ;;  %1210 = vmatprep.subr.bf16.mxu1 %v1209_v1  ;;  %v532_v23 = vld [vmem:[%s1679_s2 + $0x58] sm:$0xff]  ;;  %v1157_v24 = vpack.c.bf16 %v915_v19, %v913_v18  ;;  %v912_v25 = vld [vmem:[%s1678_s1 + $0x120] sm:$0xff]  ;;  %v914_v26 = vld [vmem:[%s1678_s1 + $0x130] sm:$0xff]  ;;  %v408_v46 = vrot.slane %v1381_v28, 2 }
  0x17   : > { %v917_v27 = vld [vmem:[%s1678_s1 + $0x148] sm:$0xff]  ;;  %v919_v30 = vld [vmem:[%s1678_s1 + $0x158] sm:$0xff]  ;;  %v1221_v31 = vpack.c.bf16 %v532_v23, %v531_v22  ;;  %v1159_v32 = vpack.c.bf16 %v914_v26, %v912_v25  ;;  %v916_v34 = vld [vmem:[%s1678_s1 + $0x140] sm:$0xff] }
  0x18   : > { %904 = vmatmul.mubr.msk.f32.vlgmr.msra.gmra.mrb[0].mxu0 %vm226_vm2, %v223_v42  ;;  %v1161_v33 = vpack.c.bf16 %v919_v30, %v917_v27  ;;  %v918_v35 = vld [vmem:[%s1678_s1 + $0x150] sm:$0xff]  ;;  %v921_v36 = vld [vmem:[%s1678_s1 + $0x168] sm:$0xff]  ;;  %v923_v37 = vld [vmem:[%s1678_s1 + $0x178] sm:$0xff]  ;;  %v409_v51 = vsel %vm406_vm3, %v407_v45, %v408_v46 }
  0x19   : > { %1140 = vmatpush1.bf16.msra.mxu0 %v1139_v43  ;;  %301 = vmatprep.mubr.f32.mxu0 %v1294_v7  ;;  %v1163_v38 = vpack.c.bf16 %v918_v35, %v916_v34  ;;  %v1165_v40 = vpack.c.bf16 %v923_v37, %v921_v36  ;;  %v920_v41 = vld [vmem:[%s1678_s1 + $0x160] sm:$0xff]  ;;  %v922_v42 = vld [vmem:[%s1678_s1 + $0x170] sm:$0xff]  ;;  %v927_v44 = vld [vmem:[%s1679_s2 + $0x88] sm:$0xff] }
  0x1a   : > { %1142 = vmatprep.subr.bf16.mxu0 %v1141_v47  ;;  %1212 = vmatpush3.bf16.msra.mxu1 %v1209_v1  ;;  %v926_v43 = vld [vmem:[%s1679_s2 + $0x80] sm:$0xff]  ;;  %v1167_v47 = vpack.c.bf16 %v922_v42, %v920_v41  ;;  %v928_v49 = vld [vmem:[%s1679_s2 + $0x90] sm:$0xff]  ;;  %v929_v50 = vld [vmem:[%s1679_s2 + $0x98] sm:$0xff] }
  0x1b   : > { %1214 = vmatprep.subr.bf16.mxu1 %v1213_v11  ;;  %v1169_v48 = vpack.c.bf16 %v927_v44, %v926_v43  ;;  %v930_v52 = vld [vmem:[%s1679_s2 + $0xa0] sm:$0xff]  ;;  %v931_v53 = vld [vmem:[%s1679_s2 + $0xa8] sm:$0xff]  ;;  %v936_v63 = vld [vmem:[%s1679_s2 + $0xd0] sm:$0xff] }
  0x1c   : > { %905 = vmatmul.mubr.msk.f32.gmra.mrb[2].mxu0 %vm226_vm2, %v225_v57  ;;  %v1177_v55 = vpack.c.bf16 %v931_v53, %v930_v52  ;;  %v935_v58 = vld [vmem:[%s1679_s2 + $0xc8] sm:$0xff]  ;;  %v937_v0 = vld [vmem:[%s1679_s2 + $0xd8] sm:$0xff]  ;;  %v942_v9 = vld [vmem:[%s1679_s2 + $0x100] sm:$0xff] }
  0x1d   : > { %1144 = vmatpush1.bf16.msra.mxu0 %v1143_v56  ;;  %376 = vmatprep.mubr.f32.mxu0 %v1294_v7  ;;  %v933_v56 = vld [vmem:[%s1679_s2 + $0xb8] sm:$0xff]  ;;  %v534_v61 = vld [vmem:[%s1679_s2 + $0x68] sm:$0xff]  ;;  %v1189_v1 = vpack.c.bf16 %v937_v0, %v936_v63  ;;  %v952_v52 = vld [vmem:[%s1679_s2 + $0x150] sm:$0xff] }
  0x1e   : > { %1146 = vmatprep.subr.bf16.mxu0 %v1145_v60  ;;  %1216 = vmatpush3.bf16.msra.mxu1 %v1213_v11  ;;  %v533_v60 = vld [vmem:[%s1679_s2 + $0x60] sm:$0xff]  ;;  %v536_v3 = vld [vmem:[%s1679_s2 + $0x78] sm:$0xff]  ;;  %v939_v6 = vld [vmem:[%s1679_s2 + $0xe8] sm:$0xff] }
  0x1f   : > { %1218 = vmatprep.subr.bf16.mxu1 %v1217_v20  ;;  %v1225_v62 = vpack.c.bf16 %v534_v61, %v533_v60  ;;  %v943_v10 = vld [vmem:[%s1679_s2 + $0x108] sm:$0xff]  ;;  %v941_v13 = vld [vmem:[%s1679_s2 + $0xf8] sm:$0xff] }
  0x20   : > { %v1233_v11 = vpack.c.bf16 %v943_v10, %v942_v9  ;;  %v945_v25 = vld [vmem:[%s1679_s2 + $0x118] sm:$0xff] }
  0x21   : > { %1148 = vmatpush1.bf16.msra.mxu0 %v1147_v2  ;;  %v535_v2 = vld [vmem:[%s1679_s2 + $0x70] sm:$0xff]  ;;  %v953_v53 = vld [vmem:[%s1679_s2 + $0x158] sm:$0xff] }
  0x22   : > { %1150 = vmatprep.subr.bf16.mxu0 %v1149_v5  ;;  %1220 = vmatpush3.bf16.msra.mxu1 %v1217_v20  ;;  %v1229_v4 = vpack.c.bf16 %v536_v3, %v535_v2  ;;  %v938_v5 = vld [vmem:[%s1679_s2 + $0xe0] sm:$0xff] }
  0x23   : > { %1222 = vmatprep.subr.bf16.mxu1 %v1221_v31  ;;  %v1193_v8 = vpack.c.bf16 %v939_v6, %v938_v5 }
  0x25   : > { %1152 = vmatpush1.bf16.msra.mxu0 %v1151_v12  ;;  %v940_v12 = vld [vmem:[%s1679_s2 + $0xf0] sm:$0xff] }
  0x26   : > { %1154 = vmatprep.subr.bf16.mxu0 %v1153_v15  ;;  %1224 = vmatpush3.bf16.msra.mxu1 %v1221_v31  ;;  %v1197_v14 = vpack.c.bf16 %v941_v13, %v940_v12 }
  0x27   : > { %1226 = vmatprep.subr.bf16.mxu1 %v1225_v62 }
  0x28   : > { %906 = vmatmul.mubr.msk.f32.vlgmr.msra.gmra.mrb[0].mxu0 %vm226_vm2, %v1384_v29  ;;  %v410_v29 = vrot.slane %v1401_v39, 2  ;;  %v932_v39 = vld [vmem:[%s1679_s2 + $0xb0] sm:$0xff] }
  0x29   : > { %1156 = vmatpush1.bf16.msra.mxu0 %v1155_v21  ;;  %382 = vmatprep.mubr.f32.mxu0 %v1294_v7  ;;  %v1181_v57 = vpack.c.bf16 %v933_v56, %v932_v39  ;;  %v955_v39 = vld [vmem:[%s1679_s2 + $0x168] sm:$0xff] }
  0x2a   : > { %1158 = vmatprep.subr.bf16.mxu0 %v1157_v24  ;;  %v411_v54 = vsel %vm406_vm3, %v408_v46, %v410_v29  ;;  %1228 = vmatpush3.bf16.msra.mxu1 %v1225_v62  ;;  %v944_v24 = vld [vmem:[%s1679_s2 + $0x110] sm:$0xff]  ;;  %v951_v29 = vld [vmem:[%s1679_s2 + $0x148] sm:$0xff] }
  0x2b   : > { %1230 = vmatprep.subr.bf16.mxu1 %v1229_v4  ;;  %v1237_v31 = vpack.c.bf16 %v945_v25, %v944_v24 }
  0x2c   : > { %907 = vmatmul.mubr.msk.f32.gmra.mrb[2].mxu0 %vm226_vm2, %v1381_v28  ;;  %v1173_v28 = vpack.c.bf16 %v929_v50, %v928_v49  ;;  %v949_v49 = vld [vmem:[%s1679_s2 + $0x138] sm:$0xff] }
  0x2d   : > { %1160 = vmatpush1.bf16.msra.mxu0 %v1159_v32  ;;  %480 = vmatprep.mubr.f32.mxu0 %v1294_v7  ;;  %v946_v32 = vld [vmem:[%s1679_s2 + $0x120] sm:$0xff] }
  0x2e   : > { %1162 = vmatprep.subr.bf16.mxu0 %v1161_v33  ;;  %1232 = vmatpush3.bf16.msra.mxu1 %v1229_v4  ;;  %v947_v33 = vld [vmem:[%s1679_s2 + $0x128] sm:$0xff] }
  0x2f   : > { %1234 = vmatprep.subr.bf16.mxu1 %v1233_v11  ;;  %v1241_v43 = vpack.c.bf16 %v947_v33, %v946_v32 }
  0x31   : > { %1164 = vmatpush1.bf16.msra.mxu0 %v1163_v38 }
  0x32   : > { %1166 = vmatprep.subr.bf16.mxu0 %v1165_v40 }
  0x35   : > { %1168 = vmatpush1.bf16.msra.mxu0 %v1167_v47 }
  0x36   : > { %1170 = vmatprep.subr.bf16.mxu0 %v1169_v48 }
  0x38   : > { %924 = vmatmul.mubr.msk.f32.vlgmr.msra.gmra.mrb[0].mxu0 %vm226_vm2, %v409_v51  ;;  %v950_v51 = vld [vmem:[%s1679_s2 + $0x140] sm:$0xff] }
  0x39   : > { %486 = vmatprep.mubr.f32.mxu0 %v1294_v7  ;;  %1172 = vmatpush3.bf16.msra.mxu0 %v1169_v48  ;;  %v934_v7 = vld [vmem:[%s1679_s2 + $0xc0] sm:$0xff]  ;;  %v948_v48 = vld [vmem:[%s1679_s2 + $0x130] sm:$0xff] }
  0x3a   : > { %1174 = vmatprep.subr.bf16.mxu0 %v1173_v28  ;;  %v1185_v59 = vpack.c.bf16 %v935_v58, %v934_v7  ;;  %v1245_v50 = vpack.c.bf16 %v949_v49, %v948_v48  ;;  %v957_v7 = vld [vmem:[%s1679_s2 + $0x178] sm:$0xff] }
  0x3c   : > { %925 = vmatmul.mubr.msk.f32.gmra.mrb[2].mxu0 %vm226_vm2, %v411_v54  ;;  %v1253_v54 = vpack.c.bf16 %v953_v53, %v952_v52 }
  0x3d   : > { %1176 = vmatpush3.bf16.msra.mxu0 %v1173_v28  ;;  %v1249_v28 = vpack.c.bf16 %v951_v29, %v950_v51 }
  0x3e   : > { %1178 = vmatprep.subr.bf16.mxu0 %v1177_v55 }
  0x41   : > { %1180 = vmatpush3.bf16.msra.mxu0 %v1177_v55  ;;  %v954_v55 = vld [vmem:[%s1679_s2 + $0x160] sm:$0xff] }
  0x42   : > { %1182 = vmatprep.subr.bf16.mxu0 %v1181_v57  ;;  %v1257_v56 = vpack.c.bf16 %v955_v39, %v954_v55 }
  0x45   : > { %1184 = vmatpush3.bf16.msra.mxu0 %v1181_v57  ;;  %v956_v57 = vld [vmem:[%s1679_s2 + $0x170] sm:$0xff] }
  0x46   : > { %1186 = vmatprep.subr.bf16.mxu0 %v1185_v59  ;;  %v1261_v58 = vpack.c.bf16 %v957_v7, %v956_v57 }
  0x49   : > { %1188 = vmatpush3.bf16.msra.mxu0 %v1185_v59 }
  0x4a   : > { %1190 = vmatprep.subr.bf16.mxu0 %v1189_v1 }
  0x4d   : > { %1192 = vmatpush3.bf16.msra.mxu0 %v1189_v1 }
  0x4e   : > { %1194 = vmatprep.subr.bf16.mxu0 %v1193_v8 }
  0x51   : > { %1196 = vmatpush3.bf16.msra.mxu0 %v1193_v8 }
  0x52   : > { %1198 = vmatprep.subr.bf16.mxu0 %v1197_v14 }
  0x55   : > { %1200 = vmatpush3.bf16.msra.mxu0 %v1197_v14 }
 0x10b   : > { %v482_v15 = vpop.f32.mrb[0].mxu0 }
 0x10c   : > { %vm497_vm4 = vcmp.gt.f32.partialorder %v482_v15, 0.0  ;;  %v499_v16 = vmul.f32 0.2, %v482_v15  ;;  %v1610_v17 = vpop.f32.mrb[1].mxu0 }
 0x10d   : > { %v505_v62 = vmul.f32 0.2, %v1610_v17  ;;  %vm503_vm7 = vcmp.gt.f32.partialorder %v1610_v17, 0.0 }
 0x10e   : > { %v501_v18 = vsel %vm497_vm4, %v482_v15, %v499_v16 }
 0x10f   : > { %v511_v19 = vrot.slane %v501_v18, 7  ;;  %v488_v20 = vpop.f32.mrb[2].mxu0  ;;  %v507_v5 = vsel %vm503_vm7, %v1610_v17, %v505_v62 }
 0x110   : > { %vm498_vm5 = vcmp.gt.f32.partialorder %v488_v20, 0.0  ;;  %v500_v21 = vmul.f32 0.2, %v488_v20  ;;  %v1612_v22 = vpop.f32.mrb[3].mxu0 }
 0x111   : > { %v519_v23 = vsel %vm175_vm0, %v501_v18, %v511_v19  ;;  %v506_v61 = vmul.f32 0.2, %v1612_v22  ;;  %vm504_vm6 = vcmp.gt.f32.partialorder %v1612_v22, 0.0 }
 0x112   : > { %v502_v26 = vsel %vm498_vm5, %v488_v20, %v500_v21  ;;  %1083 = vmatprep.mubr.f32.mxu1 %v519_v23  ;;  %v556_v35 = vrot.slane %v519_v23, 1  ;;  %v730_v36 = vrot.slane %v519_v23, 2 }
 0x113   : > { %v512_v27 = vrot.slane %v502_v26, 7  ;;  %v517_v30 = vrot.slane %v502_v26, 6  ;;  %v508_v2 = vsel %vm504_vm6, %v1612_v22, %v506_v61 }
 0x115   : > { %v520_v34 = vsel %vm175_vm0, %v512_v27, %v517_v30  ;;  %v513_v37 = vsel %vm175_vm0, %v511_v19, %v512_v27 }
 0x116   : > { %v559_v38 = vrot.slane %v520_v34, 1  ;;  %v557_v40 = vrot.slane %v513_v37, 1  ;;  %1084 = vmatmul.mubr.f32.vlgmr.msra.gmra.mrb[0].mxu1 %v513_v37  ;;  %v731_v41 = vrot.slane %v513_v37, 2  ;;  %v733_v42 = vrot.slane %v520_v34, 2 }
 0x117   : > { %1236 = vmatpush3.bf16.msra.mxu1 %v1233_v11 }
 0x118   : > { %v558_v44 = vsel %vm220_vm1, %v556_v35, %v557_v40  ;;  %1238 = vmatprep.subr.bf16.mxu1 %v1237_v31  ;;  %v732_v45 = vsel %vm406_vm3, %v730_v36, %v731_v41  ;;  %v560_v46 = vsel %vm220_vm1, %v557_v40, %v559_v38  ;;  %v734_v47 = vsel %vm406_vm3, %v731_v41, %v733_v42 }
 0x119   : > { %1048 = vmatprep.mubr.f32.mxu0 %v558_v44  ;;  %1118 = vmatprep.mubr.f32.mxu1 %v732_v45 }
 0x11a   : > { %1049 = vmatmul.mubr.f32.vlgmr.msra.gmra.mrb[4].mxu0 %v560_v46 }
 0x11b   : > { %1240 = vmatpush3.bf16.msra.mxu1 %v1237_v31 }
 0x11c   : > { %1242 = vmatprep.subr.bf16.mxu1 %v1241_v43 }
 0x11f   : > { %1244 = vmatpush3.bf16.msra.mxu1 %v1241_v43 }
 0x120   : > { %1246 = vmatprep.subr.bf16.mxu1 %v1245_v50 }
 0x123   : > { %1248 = vmatpush3.bf16.msra.mxu1 %v1245_v50 }
 0x124   : > { %1250 = vmatprep.subr.bf16.mxu1 %v1249_v28 }
 0x127   : > { %1252 = vmatpush3.bf16.msra.mxu1 %v1249_v28 }
 0x128   : > { %1254 = vmatprep.subr.bf16.mxu1 %v1253_v54 }
 0x12b   : > { %1256 = vmatpush3.bf16.msra.mxu1 %v1253_v54 }
 0x12c   : > { %1258 = vmatprep.subr.bf16.mxu1 %v1257_v56 }
 0x12f   : > { %1260 = vmatpush3.bf16.msra.mxu1 %v1257_v56 }
 0x130   : > { %1262 = vmatprep.subr.bf16.mxu1 %v1261_v58 }
 0x133   : > { %1264 = vmatpush3.bf16.msra.mxu1 %v1261_v58 }
 0x136   : > { %1119 = vmatmul.mubr.f32.vlgmr.msra.gmra.mrb[0].mxu1 %v734_v47 }
 0x1ed   : > { %v1050_v59 = vpop.f32.mrb[4].mxu0 }
 0x1ee   : > { %v629_v60 = vpop.f32.mrb[5].mxu0 }
 0x209   : > { %v1120_v63 = vpop.f32.mrb[0].mxu1 }
 0x20a   : > { %v1265_v0 = vadd.f32 %v1120_v63, %v1050_v59  ;;  %v803_v1 = vpop.f32.mrb[1].mxu1 }
 0x20b   : > { %v1266_v3 = vadd.f32 %v803_v1, %v629_v60 }
 0x20c   : > { %v815_v4 = vadd.f32 %v1265_v0, %v508_v2 }
 0x20d   : > { %v814_v6 = vadd.f32 %v1266_v3, %v507_v5 }
 0x20e   : > { %vm817_vm8 = vcmp.gt.f32.partialorder %v815_v4, 0.0  ;;  %v819_v8 = vmul.f32 0.2, %v815_v4 }
 0x20f   : > { %vm816_vm9 = vcmp.gt.f32.partialorder %v814_v6, 0.0  ;;  %v818_v9 = vmul.f32 0.2, %v814_v6 }
 0x210   : > { %v821_v10 = vsel %vm817_vm8, %v815_v4, %v819_v8 }
 0x211   : > { %823 = vst [vmem:[%s170_s19 + $0x8] sm:$0xff] %v821_v10  ;;  %v820_v11 = vsel %vm816_vm9, %v814_v6, %v818_v9 }
 0x212   : > { %822 = vst [vmem:[%s170_s19] sm:$0xff] %v820_v11 }
 0x213 PF: > { %s13_s12 = sadd.s32 1, %s1292_s12  }
 0x214   : > { %p10_p4 = scmp.ge.s32.totalorder %s13_s12, 4  }
 0x216   :  { %12 = sbr.rel (!%p10_p4) target bundleno = 1 (0x1), region = 66 }

</bundles_post_ra>
